<compile_context>
chip_gen: v5e
topology: v5e:2x2
jax: 0.10.0
libtpu: 0.0.40
codegen_flags: <defaults>
</compile_context>

<pallas_src>
import jax
import jax.numpy as jnp
from jax.experimental import pallas as pl
from jax.experimental.pallas import tpu as pltpu


def _round_up(x, m):
    return ((x + m - 1) // m) * m


def _pick_row_fold(bs, D, max_k=64):
    """Smallest k with D % k == 0 and (bs*k) % 8 == 0 (full sublane occupancy)."""
    if bs % 8 == 0:
        return 1
    for k in range(1, min(D, max_k) + 1):
        if D % k == 0 and (bs * k) % 8 == 0:
            return k
    return 1


def _pick_row_block(R, max_rows=256):
    """Row-block size: a multiple of 8 that divides R, else the full R."""
    if R <= 8:
        return R
    for tb in range(min(R, max_rows), 7, -1):
        if R % tb == 0 and tb % 8 == 0:
            return tb
    return R


def _ila_kernel(ori_ref, tar_ref, att_ref, dot_ref, nsq_ref):
    j = pl.program_id(1)  # reduction axis over feature tiles (last grid axis)

    @pl.when(j == 0)
    def _():
        dot_ref[...] = jnp.zeros_like(dot_ref)
        nsq_ref[...] = jnp.zeros_like(nsq_ref)

    ori = ori_ref[...].astype(jnp.float32)
    tar = tar_ref[...].astype(jnp.float32)
    att = att_ref[...].astype(jnp.float32)

    W = att - ori                      # perturbation direction
    V = tar - ori                      # guide direction (un-normalized)

    dot_ref[...] += jnp.sum(W * V, axis=1, keepdims=True)   # (tb, 1)
    nsq_ref[...] += jnp.sum(V * V, axis=1, keepdims=True)   # (tb, 1)


def ila_pallas(ori_mid, tar_mid, att_mid, *, max_tile_d=8192,
               vmem_input_budget=12 * 1024 * 1024):
    bs = ori_mid.shape[0]
    ori = ori_mid.reshape(bs, -1)
    tar = tar_mid.reshape(bs, -1)
    att = att_mid.reshape(bs, -1)
    D = ori.shape[1]

    # Fold features into rows so the row axis fills all 8 sublanes per vreg.
    k = _pick_row_fold(bs, D)
    R, D2 = bs * k, D // k
    ori = ori.reshape(R, D2)
    tar = tar.reshape(R, D2)
    att = att.reshape(R, D2)

    tb = _pick_row_block(R)

    # 3 inputs x 2 pipeline buffers x (tb x tile_d x itemsize) <= budget.
    itemsize = ori.dtype.itemsize
    tile_cap = vmem_input_budget // (6 * tb * itemsize)
    tile_d = min(max_tile_d,
                 _round_up(D2, 128),
                 max(128, (tile_cap // 128) * 128))

    D2p = _round_up(D2, tile_d)
    if D2p != D2:
        pad = ((0, 0), (0, D2p - D2))   # zeros contribute 0 to both accumulators
        ori = jnp.pad(ori, pad)
        tar = jnp.pad(tar, pad)
        att = jnp.pad(att, pad)

    grid = (R // tb, D2p // tile_d)
    feat_spec = pl.BlockSpec((tb, tile_d), lambda i, j: (i, j))
    acc_spec = pl.BlockSpec((tb, 1), lambda i, j: (i, 0))

    dot_rows, nsq_rows = pl.pallas_call(
        _ila_kernel,
        out_shape=(jax.ShapeDtypeStruct((R, 1), jnp.float32),
                   jax.ShapeDtypeStruct((R, 1), jnp.float32)),
        grid_spec=pltpu.PrefetchScalarGridSpec(
            num_scalar_prefetch=0,
            grid=grid,
            in_specs=[feat_spec, feat_spec, feat_spec],
            out_specs=[acc_spec, acc_spec],
        ),
        compiler_params=pltpu.CompilerParams(
            dimension_semantics=("parallel", "arbitrary"),
        ),
    )(ori, tar, att)

    # Tiny finalize in JAX: undo the row fold, then rsqrt / weighted sum / mean.
    dot_b = dot_rows.reshape(bs, k).sum(axis=1)
    nsq_b = nsq_rows.reshape(bs, k).sum(axis=1)
    return jnp.sum(dot_b * jax.lax.rsqrt(nsq_b)) / bs


def ila_ref(ori_mid, tar_mid, att_mid):
    bs = ori_mid.shape[0]
    ori = ori_mid.reshape(bs, -1)
    tar = tar_mid.reshape(bs, -1)
    att = att_mid.reshape(bs, -1)
    W = att - ori
    V = tar - ori
    V = V / jnp.linalg.norm(V, axis=1, keepdims=True)
    return jnp.sum(W * V) / bs


if __name__ == "__main__":
    key = jax.random.PRNGKey(0)
    k1, k2, k3 = jax.random.split(key, 3)

    # Small NCHW mid-layer feature maps: batch=2, channels=4, spatial=16x16.
    shape = (2, 4, 16, 16)
    ori_mid = jax.random.normal(k1, shape, dtype=jnp.float32)
    tar_mid = jax.random.normal(k2, shape, dtype=jnp.float32)
    att_mid = jax.random.normal(k3, shape, dtype=jnp.float32)

    out = ila_pallas(ori_mid, tar_mid, att_mid)
    out = jax.block_until_ready(out)

    ref = ila_ref(ori_mid, tar_mid, att_mid)
    assert jnp.allclose(out, ref, rtol=1e-5, atol=1e-4), (out, ref)

    print("KERNEL_OK")
</pallas_src>

<mosaic_0001>
module attributes {stable_mosaic.version = 11 : i64} {
  func.func @_ila_kernel(%arg0: i32, %arg1: i32, %arg2: memref<8x256xf32, #tpu.memory_space<vmem>>, %arg3: memref<8x256xf32, #tpu.memory_space<vmem>>, %arg4: memref<8x256xf32, #tpu.memory_space<vmem>>, %arg5: memref<8x1xf32, #tpu.memory_space<vmem>>, %arg6: memref<8x1xf32, #tpu.memory_space<vmem>>) attributes {dimension_semantics = [#tpu.dimension_semantics<parallel>, #tpu.dimension_semantics<arbitrary>], iteration_bounds = array<i64: 1, 1>, scalar_prefetch = 0 : i64, scratch_operands = 0 : i64, tpu.core_type = #tpu.core_type<tc>, window_params = [{transform_indices = @transform_0, window_bounds = array<i64: 8, 256>}, {transform_indices = @transform_1, window_bounds = array<i64: 8, 256>}, {transform_indices = @transform_2, window_bounds = array<i64: 8, 256>}, {transform_indices = @transform_3, window_bounds = array<i64: 8, 1>}, {transform_indices = @transform_4, window_bounds = array<i64: 8, 1>}]} {
    %c0_i32 = arith.constant 0 : i32
    %0 = arith.cmpi eq, %arg1, %c0_i32 : i32
    %1 = arith.extui %0 : i1 to i32
    %c0_i32_0 = arith.constant 0 : i32
    %2 = arith.cmpi ne, %1, %c0_i32_0 : i32
    scf.if %2 {
      %cst_15 = arith.constant 0.000000e+00 : f32
      %20 = vector.broadcast %cst_15 : f32 to vector<8x1xf32>
      %c0_16 = arith.constant 0 : index
      %c0_17 = arith.constant 0 : index
      %21 = vector.load %arg5[%c0_16, %c0_17] : memref<8x1xf32, #tpu.memory_space<vmem>>, vector<8x1xf32>
      tpu.vector_store %arg5[%c0_16, %c0_17], %20 {strides = array<i32>} : memref<8x1xf32, #tpu.memory_space<vmem>>, vector<8x1xf32>,
      %cst_18 = arith.constant 0.000000e+00 : f32
      %22 = vector.broadcast %cst_18 : f32 to vector<8x1xf32>
      %c0_19 = arith.constant 0 : index
      %c0_20 = arith.constant 0 : index
      %23 = vector.load %arg6[%c0_19, %c0_20] : memref<8x1xf32, #tpu.memory_space<vmem>>, vector<8x1xf32>
      tpu.vector_store %arg6[%c0_19, %c0_20], %22 {strides = array<i32>} : memref<8x1xf32, #tpu.memory_space<vmem>>, vector<8x1xf32>,
    } else {
    }
    %c0 = arith.constant 0 : index
    %c0_1 = arith.constant 0 : index
    %3 = vector.load %arg2[%c0, %c0_1] : memref<8x256xf32, #tpu.memory_space<vmem>>, vector<8x256xf32>
    %c0_2 = arith.constant 0 : index
    %c0_3 = arith.constant 0 : index
    %4 = vector.load %arg3[%c0_2, %c0_3] : memref<8x256xf32, #tpu.memory_space<vmem>>, vector<8x256xf32>
    %c0_4 = arith.constant 0 : index
    %c0_5 = arith.constant 0 : index
    %5 = vector.load %arg4[%c0_4, %c0_5] : memref<8x256xf32, #tpu.memory_space<vmem>>, vector<8x256xf32>
    %6 = arith.subf %5, %3 : vector<8x256xf32>
    %7 = arith.subf %4, %3 : vector<8x256xf32>
    %c0_6 = arith.constant 0 : index
    %c0_7 = arith.constant 0 : index
    %8 = vector.load %arg5[%c0_6, %c0_7] : memref<8x1xf32, #tpu.memory_space<vmem>>, vector<8x1xf32>
    %9 = arith.mulf %6, %7 : vector<8x256xf32>
    %cst = arith.constant dense<0.000000e+00> : vector<8xf32>
    %10 = vector.multi_reduction <add>, %9, %cst [1] : vector<8x256xf32> to vector<8xf32>
    %11 = vector.shape_cast %10 : vector<8xf32> to vector<8x1xf32>
    %12 = arith.addf %8, %11 : vector<8x1xf32>
    %c0_8 = arith.constant 0 : index
    %c0_9 = arith.constant 0 : index
    %13 = vector.load %arg5[%c0_8, %c0_9] : memref<8x1xf32, #tpu.memory_space<vmem>>, vector<8x1xf32>
    tpu.vector_store %arg5[%c0_8, %c0_9], %12 {strides = array<i32>} : memref<8x1xf32, #tpu.memory_space<vmem>>, vector<8x1xf32>,
    %c0_10 = arith.constant 0 : index
    %c0_11 = arith.constant 0 : index
    %14 = vector.load %arg6[%c0_10, %c0_11] : memref<8x1xf32, #tpu.memory_space<vmem>>, vector<8x1xf32>
    %15 = arith.mulf %7, %7 : vector<8x256xf32>
    %cst_12 = arith.constant dense<0.000000e+00> : vector<8xf32>
    %16 = vector.multi_reduction <add>, %15, %cst_12 [1] : vector<8x256xf32> to vector<8xf32>
    %17 = vector.shape_cast %16 : vector<8xf32> to vector<8x1xf32>
    %18 = arith.addf %14, %17 : vector<8x1xf32>
    %c0_13 = arith.constant 0 : index
    %c0_14 = arith.constant 0 : index
    %19 = vector.load %arg6[%c0_13, %c0_14] : memref<8x1xf32, #tpu.memory_space<vmem>>, vector<8x1xf32>
    tpu.vector_store %arg6[%c0_13, %c0_14], %18 {strides = array<i32>} : memref<8x1xf32, #tpu.memory_space<vmem>>, vector<8x1xf32>,
    return
  }
  func.func @transform_0(%arg0: i32, %arg1: i32) -> (i32, i32) {
    %c0_i32 = arith.constant 0 : i32
    return %arg0, %arg1 : i32, i32
  }
  func.func @transform_1(%arg0: i32, %arg1: i32) -> (i32, i32) {
    %c0_i32 = arith.constant 0 : i32
    return %arg0, %arg1 : i32, i32
  }
  func.func @transform_2(%arg0: i32, %arg1: i32) -> (i32, i32) {
    %c0_i32 = arith.constant 0 : i32
    return %arg0, %arg1 : i32, i32
  }
  func.func @transform_3(%arg0: i32, %arg1: i32) -> (i32, i32) {
    %c0_i32 = arith.constant 0 : i32
    %c0_i32_0 = arith.constant 0 : i32
    return %arg0, %c0_i32 : i32, i32
  }
  func.func @transform_4(%arg0: i32, %arg1: i32) -> (i32, i32) {
    %c0_i32 = arith.constant 0 : i32
    %c0_i32_0 = arith.constant 0 : i32
    return %arg0, %c0_i32 : i32, i32
  }
}

</mosaic_0001>

<bundles_post_ra>
// kernel: tpu_custom_call.1
= control target key start
LH: loop header
LB: loop body
LE: loop exit
PB: predicated region body
PF: predicated region fallthrough
CT: control target
= control target key end

     0   :  { %10 = vsyncpa [#allocation3], 0  ;;  %s241_s0 = inlined_call_operand.hbm [shape: f32[8,256], index: 0, kind: input, shape index: {}]   ;;  %s242_s1 = inlined_call_operand.hbm [shape: f32[8,256], index: 1, kind: input, shape index: {}]   ;;  %s243_s2 = inlined_call_operand.hbm [shape: f32[8,256], index: 2, kind: input, shape index: {}]   ;;  %s244_s3 = inlined_call_operand.vmem [shape: f32[8,1], index: 3, kind: output, shape index: {0}]   ;;  %s245_s4 = inlined_call_operand.vmem [shape: f32[8,1], index: 4, kind: output, shape index: {1}]  }
   0x1   :  { %11 = vsyncpa [#allocation5], 0  ;;  %s28_s17 = sshll.u32 %s242_s1, 4  ;;  %s181_s18 = smov [#allocation4]   ;;  %s29_s17 = int_to_ptr.hbm [resolvable:$true] %s28_s17 }
   0x2   :  { %s30_s19 = sshll.u32 %s181_s18, 4  ;;  %s17_s22 = sshll.u32 %s241_s0, 4  ;;  %s31_s19 = int_to_ptr.vmem [resolvable:$true] %s30_s19  ;;  %s18_s22 = int_to_ptr.hbm [resolvable:$true] %s17_s22 }
   0x3   :  { %33 = dma.hbm_to_vmem [thread:$0]  %s29_s17, 256, %s31_s19, [#allocation5]  }
   0x4   :  { %s182_s23 = smov [#allocation2]   ;;  %s39_s27 = sshll.u32 %s243_s2, 4  ;;  %s40_s27 = int_to_ptr.hbm [resolvable:$true] %s39_s27 }
   0x5   :  { %s19_s24 = sshll.u32 %s182_s23, 4  ;;  %s183_s1 = smov [#allocation6]   ;;  %s20_s24 = int_to_ptr.vmem [resolvable:$true] %s19_s24 }
   0x6   :  { %22 = dma.hbm_to_vmem [thread:$0]  %s18_s22, 256, %s20_s24, [#allocation3]  }
   0x7   :  { %s41_s28 = sshll.u32 %s183_s1, 4  ;;  %s42_s28 = int_to_ptr.vmem [resolvable:$true] %s41_s28 }
   0x8   :  { %44 = dma.hbm_to_vmem [thread:$0]  %s40_s27, 256, %s42_s28, [#allocation5]  }
   0x9   :  { %177 = dma.done.wait [#allocation3], 256  }
   0xa   :  { %178 = vsyncadd [#allocation3], 4294967040 }
   0xb   :  { %179 = dma.done.wait [#allocation5], 512  }
   0xc   :  { %180 = vsyncadd [#allocation5], 4294966784  ;;  %vm61_vm0 = vcmask 7168   ;;  %v184_v0 = vmov 0.0   ;;  %v64_v1 = vld [vmem:[#allocation2] sm:$0xff]  ;;  %v65_v2 = vld [vmem:[#allocation2 + $0x8] sm:$0xff] }
   0xd   :  { %62 = vst.msk [vmem:[%s244_s3] sm:$0xff] %vm61_vm0, %v184_v0  ;;  %v66_v3 = vld [vmem:[#allocation4] sm:$0xff]  ;;  %v67_v4 = vld [vmem:[#allocation4 + $0x8] sm:$0xff]  ;;  %v68_v5 = vld [vmem:[#allocation6] sm:$0xff] }
   0xe   :  { %63 = vst.msk [vmem:[%s245_s4] sm:$0xff] %vm61_vm0, %v184_v0  ;;  %v69_v6 = vld [vmem:[#allocation6 + $0x8] sm:$0xff]  ;;  %v72_v7 = vsub.f32 %v66_v3, %v64_v1  ;;  %v70_v8 = vsub.f32 %v68_v5, %v64_v1  ;;  %v73_v10 = vsub.f32 %v67_v4, %v65_v2 }
   0xf   :  { %v71_v9 = vsub.f32 %v69_v6, %v65_v2 }
  0x10   :  { %v75_v11 = vmul.f32 %v72_v7, %v70_v8  ;;  %v84_v14 = vmul.f32 %v72_v7, %v72_v7  ;;  %v85_v15 = vmul.f32 %v73_v10, %v73_v10 }
  0x11   :  { %v76_v12 = vmul.f32 %v73_v10, %v71_v9 }
  0x12   :  { %v86_v16 = vadd.f32 %v85_v15, %v84_v14 }
  0x13   :  { %v77_v13 = vadd.f32 %v76_v12, %v75_v11 }
  0x14   :  { %v74_v17 = vld [vmem:[%s244_s3] sm:$0xff] }
  0x15   :  { %78 = vadd.xlane.f32.xlu0 %v77_v13  ;;  %v83_v20 = vld [vmem:[%s245_s4] sm:$0xff] }
  0x1d   :  { %87 = vadd.xlane.f32.xlu0 %v86_v16 }
  0x88   :  { %v79_v18 = vpop.xlane.xlu0 %78 }
  0x89   :  { %v80_v19 = vadd.f32 %v79_v18, %v74_v17 }
  0x8b   :  { %82 = vst.msk [vmem:[%s244_s3] sm:$0xff] %vm61_vm0, %v80_v19 }
  0x90   :  { %v88_v21 = vpop.xlane.xlu0 %87 }
  0x91   :  { %v89_v22 = vadd.f32 %v88_v21, %v83_v20 }
  0x93   :  { %90 = vst.msk [vmem:[%s245_s4] sm:$0xff] %vm61_vm0, %v89_v22 }
  0x94   :  { %99 = vsyncpa [#allocation3], 1 }
  0x95   :  { %100 = vsyncpa [#allocation5], 1 }

</bundles_post_ra>
